<compile_context>
chip_gen: v5e
topology: v5e:2x2
jax: 0.10.0
libtpu: 0.0.40
codegen_flags: <defaults>
</compile_context>

<pallas_src>
import jax
import jax.numpy as jnp
from jax.experimental import pallas as pl
from jax.experimental.pallas import tpu as pltpu


def _round_up(x, m):
    return ((x + m - 1) // m) * m


def _expert_kernel(x_ref, w1_ref, b1_ref, w2_ref, b2_ref, o_ref):
    # Layout (feature-on-sublane, batch-on-lane):
    #   x:  (in_dim, T)   w1: (H, in_dim)  b1: (H, 1)
    #   w2: (O, H)        b2: (O, 1)       o:  (O, T)
    w1 = w1_ref[...]
    w2 = w2_ref[...]
    in_dim = w1.shape[1]
    hidden = w2.shape[1]

    # Layer 1: Linear(2, 4) + ReLU.  K=2 contraction unrolled as VPU FMAs (no MXU).
    h = b1_ref[...]                                   # (H, 1) -> broadcasts to (H, T)
    for k in range(in_dim):
        h = h + w1[:, k:k + 1] * x_ref[k:k + 1, :]
    h = jnp.maximum(h, 0.0)

    # Layer 2: Linear(4, out).  K=4 contraction unrolled as VPU FMAs.
    logits = b2_ref[...]                              # (O, 1)
    for k in range(hidden):
        logits = logits + w2[:, k:k + 1] * h[k:k + 1, :]

    # Numerically stable softmax over the feature axis (sublanes); each lane = one batch row.
    m = jnp.max(logits, axis=0, keepdims=True)        # (1, T)
    e = jnp.exp(logits - m)
    denom = jnp.sum(e, axis=0, keepdims=True)         # (1, T)
    o_ref[...] = (e / denom).astype(o_ref.dtype)      # exact divide: keeps 1e-6-level accuracy


def expert_layers_shallow_forward(x, w1, b1, w2, b2, *, max_tile_n=2048):
    """x: (N, 2) f32.  Params in PyTorch nn.Linear layout:
    w1: (4, 2), b1: (4,), w2: (out, 4), b2: (out,).  Returns (N, out) softmax probs."""
    n, in_dim = x.shape
    hidden = w1.shape[0]
    out_dim = w2.shape[0]

    # Batch tile: multiple of 128 (lane width).  Double-buffered VMEM footprint is
    # 2*(in_dim + out_dim)*tile_n*4 B -> far below scoped limits on v5e/v6e/v7x.
    tile_n = min(max_tile_n, _round_up(n, 128))
    n_pad = _round_up(n, tile_n)

    # Layout plumbing: pad batch to a tile multiple and put batch on the lane axis.
    if n_pad != n:
        x = jnp.pad(x, ((0, n_pad - n), (0, 0)))
    x_t = x.T                                          # (in_dim, n_pad)
    b1c = b1.reshape(hidden, 1)
    b2c = b2.reshape(out_dim, 1)

    out_t = pl.pallas_call(
        _expert_kernel,
        out_shape=jax.ShapeDtypeStruct((out_dim, n_pad), jnp.float32),
        grid=(n_pad // tile_n,),
        in_specs=[
            pl.BlockSpec((in_dim, tile_n), lambda i: (0, i)),   # streamed activations
            pl.BlockSpec((hidden, in_dim), lambda i: (0, 0)),   # weights: VMEM-resident
            pl.BlockSpec((hidden, 1), lambda i: (0, 0)),
            pl.BlockSpec((out_dim, hidden), lambda i: (0, 0)),
            pl.BlockSpec((out_dim, 1), lambda i: (0, 0)),
        ],
        out_specs=pl.BlockSpec((out_dim, tile_n), lambda i: (0, i)),
        compiler_params=pltpu.CompilerParams(
            dimension_semantics=("parallel",),
        ),
    )(x_t, w1, b1c, w2, b2c)

    return out_t[:, :n].T                              # back to (N, out)


def init_params(key, output):
    """Deterministic init with PyTorch nn.Linear layout: W (out_feat, in_feat), b (out_feat,)."""
    k1, k2, k3, k4 = jax.random.split(key, 4)
    w1 = jax.random.normal(k1, (4, 2), jnp.float32) * 0.5       # Linear(2, 4).weight
    b1 = jax.random.normal(k2, (4,), jnp.float32) * 0.1         # Linear(2, 4).bias
    w2 = jax.random.normal(k3, (output, 4), jnp.float32) * 0.5  # Linear(4, output).weight
    b2 = jax.random.normal(k4, (output,), jnp.float32) * 0.1    # Linear(4, output).bias
    return w1, b1, w2, b2


if __name__ == "__main__":
    key = jax.random.PRNGKey(0)
    kx, kp = jax.random.split(key)

    batch = 8
    output = 4
    x = jax.random.normal(kx, (batch, 2), jnp.float32)
    w1, b1, w2, b2 = init_params(kp, output)

    y = jax.jit(expert_layers_shallow_forward)(x, w1, b1, w2, b2)
    y = jax.block_until_ready(y)

    # Pure-JAX reference (same math as the PyTorch module), forced to full f32 precision
    # so TPU-default reduced-precision matmuls don't corrupt the comparison.
    hp = jax.lax.Precision.HIGHEST
    h_ref = jnp.maximum(jnp.einsum("ni,hi->nh", x, w1, precision=hp) + b1, 0.0)
    logits_ref = jnp.einsum("nh,oh->no", h_ref, w2, precision=hp) + b2
    y_ref = jax.nn.softmax(logits_ref, axis=1)

    assert y.shape == (batch, output)
    assert jnp.allclose(y, y_ref, atol=1e-5, rtol=1e-5), "mismatch vs reference"
    assert jnp.allclose(jnp.sum(y, axis=1), 1.0, atol=1e-5), "softmax rows must sum to 1"

    print("KERNEL_OK")
</pallas_src>

<mosaic_0001>
module attributes {stable_mosaic.version = 11 : i64} {
  func.func @_expert_kernel(%arg0: i32, %arg1: memref<2x128xf32, #tpu.memory_space<vmem>>, %arg2: memref<4x2xf32, #tpu.memory_space<vmem>>, %arg3: memref<4x1xf32, #tpu.memory_space<vmem>>, %arg4: memref<4x4xf32, #tpu.memory_space<vmem>>, %arg5: memref<4x1xf32, #tpu.memory_space<vmem>>, %arg6: memref<4x128xf32, #tpu.memory_space<vmem>>) attributes {dimension_semantics = [#tpu.dimension_semantics<parallel>], iteration_bounds = array<i64: 1>, scalar_prefetch = 0 : i64, scratch_operands = 0 : i64, tpu.core_type = #tpu.core_type<tc>, window_params = [{transform_indices = @transform_0, window_bounds = array<i64: 2, 128>}, {pipeline_mode = #tpu.pipeline_mode<synchronous>, transform_indices = @transform_1, window_bounds = array<i64: 4, 2>}, {pipeline_mode = #tpu.pipeline_mode<synchronous>, transform_indices = @transform_2, window_bounds = array<i64: 4, 1>}, {pipeline_mode = #tpu.pipeline_mode<synchronous>, transform_indices = @transform_3, window_bounds = array<i64: 4, 4>}, {pipeline_mode = #tpu.pipeline_mode<synchronous>, transform_indices = @transform_4, window_bounds = array<i64: 4, 1>}, {transform_indices = @transform_5, window_bounds = array<i64: 4, 128>}]} {
    %c0 = arith.constant 0 : index
    %c0_0 = arith.constant 0 : index
    %0 = vector.load %arg2[%c0, %c0_0] : memref<4x2xf32, #tpu.memory_space<vmem>>, vector<4x2xf32>
    %c0_1 = arith.constant 0 : index
    %c0_2 = arith.constant 0 : index
    %1 = vector.load %arg4[%c0_1, %c0_2] : memref<4x4xf32, #tpu.memory_space<vmem>>, vector<4x4xf32>
    %c0_3 = arith.constant 0 : index
    %c0_4 = arith.constant 0 : index
    %2 = vector.load %arg3[%c0_3, %c0_4] : memref<4x1xf32, #tpu.memory_space<vmem>>, vector<4x1xf32>
    %3 = vector.extract_strided_slice %0 {offsets = [0, 0], sizes = [4, 1], strides = [1, 1]} : vector<4x2xf32> to vector<4x1xf32>
    %c0_5 = arith.constant 0 : index
    %c0_6 = arith.constant 0 : index
    %4 = vector.load %arg1[%c0_5, %c0_6] : memref<2x128xf32, #tpu.memory_space<vmem>>, vector<1x128xf32>
    %5 = vector.broadcast %3 : vector<4x1xf32> to vector<4x128xf32>
    %6 = vector.broadcast %4 : vector<1x128xf32> to vector<4x128xf32>
    %7 = arith.mulf %5, %6 : vector<4x128xf32>
    %8 = vector.broadcast %2 : vector<4x1xf32> to vector<4x128xf32>
    %9 = arith.addf %8, %7 : vector<4x128xf32>
    %10 = vector.extract_strided_slice %0 {offsets = [0, 1], sizes = [4, 1], strides = [1, 1]} : vector<4x2xf32> to vector<4x1xf32>
    %c1 = arith.constant 1 : index
    %c0_7 = arith.constant 0 : index
    %11 = vector.load %arg1[%c1, %c0_7] : memref<2x128xf32, #tpu.memory_space<vmem>>, vector<1x128xf32>
    %12 = vector.broadcast %10 : vector<4x1xf32> to vector<4x128xf32>
    %13 = vector.broadcast %11 : vector<1x128xf32> to vector<4x128xf32>
    %14 = arith.mulf %12, %13 : vector<4x128xf32>
    %15 = arith.addf %9, %14 : vector<4x128xf32>
    %cst = arith.constant 0.000000e+00 : f32
    %16 = vector.broadcast %cst : f32 to vector<4x128xf32>
    %17 = arith.maximumf %15, %16 : vector<4x128xf32>
    %c0_8 = arith.constant 0 : index
    %c0_9 = arith.constant 0 : index
    %18 = vector.load %arg5[%c0_8, %c0_9] : memref<4x1xf32, #tpu.memory_space<vmem>>, vector<4x1xf32>
    %19 = vector.extract_strided_slice %1 {offsets = [0, 0], sizes = [4, 1], strides = [1, 1]} : vector<4x4xf32> to vector<4x1xf32>
    %20 = vector.extract_strided_slice %17 {offsets = [0, 0], sizes = [1, 128], strides = [1, 1]} : vector<4x128xf32> to vector<1x128xf32>
    %21 = vector.broadcast %19 : vector<4x1xf32> to vector<4x128xf32>
    %22 = vector.broadcast %20 : vector<1x128xf32> to vector<4x128xf32>
    %23 = arith.mulf %21, %22 : vector<4x128xf32>
    %24 = vector.broadcast %18 : vector<4x1xf32> to vector<4x128xf32>
    %25 = arith.addf %24, %23 : vector<4x128xf32>
    %26 = vector.extract_strided_slice %1 {offsets = [0, 1], sizes = [4, 1], strides = [1, 1]} : vector<4x4xf32> to vector<4x1xf32>
    %27 = vector.extract_strided_slice %17 {offsets = [1, 0], sizes = [1, 128], strides = [1, 1]} : vector<4x128xf32> to vector<1x128xf32>
    %28 = vector.broadcast %26 : vector<4x1xf32> to vector<4x128xf32>
    %29 = vector.broadcast %27 : vector<1x128xf32> to vector<4x128xf32>
    %30 = arith.mulf %28, %29 : vector<4x128xf32>
    %31 = arith.addf %25, %30 : vector<4x128xf32>
    %32 = vector.extract_strided_slice %1 {offsets = [0, 2], sizes = [4, 1], strides = [1, 1]} : vector<4x4xf32> to vector<4x1xf32>
    %33 = vector.extract_strided_slice %17 {offsets = [2, 0], sizes = [1, 128], strides = [1, 1]} : vector<4x128xf32> to vector<1x128xf32>
    %34 = vector.broadcast %32 : vector<4x1xf32> to vector<4x128xf32>
    %35 = vector.broadcast %33 : vector<1x128xf32> to vector<4x128xf32>
    %36 = arith.mulf %34, %35 : vector<4x128xf32>
    %37 = arith.addf %31, %36 : vector<4x128xf32>
    %38 = vector.extract_strided_slice %1 {offsets = [0, 3], sizes = [4, 1], strides = [1, 1]} : vector<4x4xf32> to vector<4x1xf32>
    %39 = vector.extract_strided_slice %17 {offsets = [3, 0], sizes = [1, 128], strides = [1, 1]} : vector<4x128xf32> to vector<1x128xf32>
    %40 = vector.broadcast %38 : vector<4x1xf32> to vector<4x128xf32>
    %41 = vector.broadcast %39 : vector<1x128xf32> to vector<4x128xf32>
    %42 = arith.mulf %40, %41 : vector<4x128xf32>
    %43 = arith.addf %37, %42 : vector<4x128xf32>
    %cst_10 = arith.constant dense<0xFF800000> : vector<128xf32>
    %44 = vector.multi_reduction <maximumf>, %43, %cst_10 [0] : vector<4x128xf32> to vector<128xf32>
    %45 = vector.shape_cast %44 : vector<128xf32> to vector<1x128xf32>
    %46 = vector.broadcast %45 : vector<1x128xf32> to vector<4x128xf32>
    %47 = arith.subf %43, %46 : vector<4x128xf32>
    %48 = math.exp %47 : vector<4x128xf32>
    %cst_11 = arith.constant dense<0.000000e+00> : vector<128xf32>
    %49 = vector.multi_reduction <add>, %48, %cst_11 [0] : vector<4x128xf32> to vector<128xf32>
    %50 = vector.shape_cast %49 : vector<128xf32> to vector<1x128xf32>
    %51 = vector.broadcast %50 : vector<1x128xf32> to vector<4x128xf32>
    %52 = arith.divf %48, %51 : vector<4x128xf32>
    %c0_12 = arith.constant 0 : index
    %c0_13 = arith.constant 0 : index
    %53 = vector.load %arg6[%c0_12, %c0_13] : memref<4x128xf32, #tpu.memory_space<vmem>>, vector<4x128xf32>
    tpu.vector_store %arg6[%c0_12, %c0_13], %52 {strides = array<i32>} : memref<4x128xf32, #tpu.memory_space<vmem>>, vector<4x128xf32>,
    return
  }
  func.func @transform_0(%arg0: i32) -> (i32, i32) {
    %c0_i32 = arith.constant 0 : i32
    %c0_i32_0 = arith.constant 0 : i32
    return %c0_i32, %arg0 : i32, i32
  }
  func.func @transform_1(%arg0: i32) -> (i32, i32) {
    %c0_i32 = arith.constant 0 : i32
    %c0_i32_0 = arith.constant 0 : i32
    %c0_i32_1 = arith.constant 0 : i32
    return %c0_i32, %c0_i32_0 : i32, i32
  }
  func.func @transform_2(%arg0: i32) -> (i32, i32) {
    %c0_i32 = arith.constant 0 : i32
    %c0_i32_0 = arith.constant 0 : i32
    %c0_i32_1 = arith.constant 0 : i32
    return %c0_i32, %c0_i32_0 : i32, i32
  }
  func.func @transform_3(%arg0: i32) -> (i32, i32) {
    %c0_i32 = arith.constant 0 : i32
    %c0_i32_0 = arith.constant 0 : i32
    %c0_i32_1 = arith.constant 0 : i32
    return %c0_i32, %c0_i32_0 : i32, i32
  }
  func.func @transform_4(%arg0: i32) -> (i32, i32) {
    %c0_i32 = arith.constant 0 : i32
    %c0_i32_0 = arith.constant 0 : i32
    %c0_i32_1 = arith.constant 0 : i32
    return %c0_i32, %c0_i32_0 : i32, i32
  }
  func.func @transform_5(%arg0: i32) -> (i32, i32) {
    %c0_i32 = arith.constant 0 : i32
    %c0_i32_0 = arith.constant 0 : i32
    return %c0_i32, %arg0 : i32, i32
  }
}

</mosaic_0001>

<bundles_post_ra>
// kernel: expert_layers_shallow_forward.1
= control target key start
LH: loop header
LB: loop body
LE: loop exit
PB: predicated region body
PF: predicated region fallthrough
CT: control target
= control target key end

     0   :  { %v137_v0 = vmov 1   ;;  %v138_v1 = vmov 0   ;;  %v139_v6 = vmov 2   ;;  %v140_v7 = vmov 3   ;;  %s192_s1 = inlined_call_operand.vmem [shape: f32[4,2], index: 1, kind: input, shape index: {}]   ;;  %s193_s4 = inlined_call_operand.vmem [shape: f32[4,1], index: 4, kind: input, shape index: {}]   ;;  %s194_s0 = inlined_call_operand.vmem [shape: f32[2,128], index: 0, kind: input, shape index: {}]   ;;  %s195_s2 = inlined_call_operand.vmem [shape: f32[4,1], index: 2, kind: input, shape index: {}]   ;;  %s196_s3 = inlined_call_operand.vmem [shape: f32[4,4], index: 3, kind: input, shape index: {}]   ;;  %s197_s5 = inlined_call_operand.vmem [shape: f32[4,128], index: 5, kind: output, shape index: {}]  }
   0x1   :  { %124 = vset.pattern.permute.xlu1 %v137_v0  ;;  %123 = vset.pattern.permute.xlu0 %v138_v1  ;;  %v20_v2 = vld [vmem:[%s192_s1] sm:$0xf]  ;;  %vm81_vm0 = vcmask 1043456  }
   0x2   :  { %39 = vperm.xlu1 %124, %v20_v2   ;;  %26 = vperm.xlu0 %123, %v20_v2   ;;  %v46_v3 = vld [vmem:[%s193_s4] sm:$0xf] }
   0x3   :  { %126 = vset.pattern.permute.xlu2 %v138_v1  ;;  %v22_v4 = vld [vmem:[%s195_s2] sm:$0xf] }
   0x4   :  { %56 = vperm.xlu2 %126, %v46_v3   ;;  %v21_v5 = vld [vmem:[%s196_s3] sm:$0xf] }
   0x5   :  { %v131_v10 = vld [vmem:[%s194_s0] ss:$0 sm:$0xff]  ;;  %v132_v11 = vld [vmem:[%s194_s0 + $0x1] ss:$0 sm:$0xff] }
   0xa   :  { %125 = vset.pattern.permute.xlu1 %v138_v1  ;;  %33 = vperm.xlu0 %123, %v22_v4  }
   0xb   :  { %49 = vperm.xlu1 %125, %v21_v5  }
   0xc   :  { %127 = vset.pattern.permute.xlu2 %v137_v0 }
   0xd   :  { %61 = vperm.xlu2 %127, %v21_v5  }
  0x12   :  { %128 = vset.pattern.permute.xlu0 %v139_v6 }
  0x13   :  { %129 = vset.pattern.permute.xlu1 %v140_v7  ;;  %68 = vperm.xlu0 %128, %v21_v5  }
  0x14   :  { %75 = vperm.xlu1 %129, %v21_v5  }
  0x1b   :  { %130 = vset.pattern.permute.xlu0 %v140_v7 }
  0x5e   :  { %v57_v12 = vpop.permute.xlu2 %56 }
  0x67   :  { %v62_v22 = vpop.permute.xlu2 %61 }
  0x74   :  { %v27_v8 = vpop.permute.xlu0 %26  ;;  %v40_v9 = vpop.permute.xlu1 %39 }
  0x75   :  { %v30_v13 = vmul.f32 %v131_v10, %v27_v8  ;;  %v43_v15 = vmul.f32 %v132_v11, %v40_v9 }
  0x7c   :  { %v34_v14 = vpop.permute.xlu0 %33 }
  0x7d   :  { %v36_v16 = vadd.f32 %v34_v14, %v30_v13  ;;  %v50_v17 = vpop.permute.xlu1 %49 }
  0x7f   :  { %v44_v18 = vadd.f32 %v43_v15, %v36_v16 }
  0x81   :  { %v45_v19 = vmax.f32 %v44_v18, 0.0 }
  0x83   :  { %v52_v20 = vperm.slane %v45_v19, 0  ;;  %v64_v21 = vperm.slane %v45_v19, 1  ;;  %v71_v24 = vperm.slane %v45_v19, 2  ;;  %v78_v31 = vperm.slane %v45_v19, 3 }
  0x85   :  { %v53_v23 = vmul.f32 %v52_v20, %v50_v17  ;;  %v69_v25 = vpop.permute.xlu0 %68  ;;  %v65_v27 = vmul.f32 %v64_v21, %v62_v22 }
  0x86   :  { %v76_v28 = vpop.permute.xlu1 %75  ;;  %v72_v30 = vmul.f32 %v71_v24, %v69_v25 }
  0x87   :  { %v59_v26 = vadd.f32 %v57_v12, %v53_v23  ;;  %v79_v33 = vmul.f32 %v78_v31, %v76_v28 }
  0x89   :  { %v66_v29 = vadd.f32 %v65_v27, %v59_v26 }
  0x8b   :  { %v73_v32 = vadd.f32 %v72_v30, %v66_v29 }
  0x8d   :  { %v80_v34 = vadd.f32 %v79_v33, %v73_v32 }
  0x8f   :  { %v82_v35 = vsel %vm81_vm0, %v80_v34, -inf }
  0x90   :  { %v83_v36 = vrot.slane %v82_v35, 4 }
  0x92   :  { %v84_v37 = vmax.f32 %v82_v35, %v83_v36 }
  0x94   :  { %v85_v38 = vrot.slane %v84_v37, 2 }
  0x96   :  { %v86_v39 = vmax.f32 %v84_v37, %v85_v38 }
  0x98   :  { %v87_v40 = vrot.slane %v86_v39, 1 }
  0x9a   :  { %v88_v41 = vmax.f32 %v86_v39, %v87_v40 }
  0x9c   :  { %v89_v42 = vsub.f32 %v80_v34, %v88_v41 }
  0x9e   :  { %v90_v43 = vmul.f32 1.442695, %v89_v42 }
  0xa0   :  { %133 = vpow2.f32 %v90_v43 }
  0xa6   :  { %v134_v44 = vpop.eup %133 }
  0xa7   :  { %v92_v45 = vsel %vm81_vm0, %v134_v44, 0.0 }
  0xa8   :  { %v93_v46 = vrot.slane %v92_v45, 4 }
  0xaa   :  { %v94_v47 = vadd.f32 %v93_v46, %v92_v45 }
  0xac   :  { %v95_v48 = vrot.slane %v94_v47, 2 }
  0xae   :  { %v96_v49 = vadd.f32 %v95_v48, %v94_v47 }
  0xb0   :  { %v97_v50 = vrot.slane %v96_v49, 1 }
  0xb2   :  { %v98_v51 = vadd.f32 %v97_v50, %v96_v49 }
  0xb4   :  { %135 = vrcp.f32 %v98_v51  ;;  %v110_v55 = vand.u32 2147483648, %v98_v51  ;;  %v108_v57 = vand.u32 2147483647, %v98_v51  ;;  %vm104_vm2 = vweird.f32 %v98_v51 }
  0xb6   :  { %v111_v59 = vor.u32 1.1754944e-38, %v110_v55  ;;  %vm109_vm4 = vcmp.eq.f32.partialorder %v108_v57, 8.507059e+37 }
  0xba   :  { %v136_v52 = vpop.eup %135 }
  0xbb   :  { %v100_v53 = vmul.f32 %v136_v52, %v98_v51  ;;  %vm105_vm1 = vweird.f32 %v136_v52 }
  0xbc   :  { %vm106_vm3 = vmor %vm104_vm2, %vm105_vm1 }
  0xbd   :  { %v101_v54 = vsub.f32 1.0, %v100_v53 }
  0xbf   :  { %v102_v56 = vmul.f32 %v136_v52, %v101_v54 }
  0xc1   :  { %v103_v58 = vadd.f32 %v136_v52, %v102_v56 }
  0xc3   :  { %v107_v60 = vsel %vm106_vm3, %v136_v52, %v103_v58 }
  0xc4   :  { %v112_v61 = vsel %vm109_vm4, %v111_v59, %v107_v60 }
  0xc5   :  { %v113_v62 = vmul.f32 %v134_v44, %v112_v61 }
  0xc7   :  { %114 = vst [vmem:[%s197_s5] sm:$0xf] %v113_v62 }

</bundles_post_ra>
